<compile_context>
chip_gen: v5e
topology: v5e:2x2
jax: 0.10.0
libtpu: 0.0.40
codegen_flags: <defaults>
</compile_context>

<pallas_src>
import jax
import jax.numpy as jnp
from jax.experimental import pallas as pl
from jax.experimental.pallas import tpu as pltpu

KERNEL_SIZE = 3  # torch forward hard-codes the `c * 9` reshape

_LANE = 128
_VMEM_LIMIT_BYTES = 48 * 1024 * 1024   # explicit scoped-VMEM cap (< v7x's 64 MiB physical)
_WORKING_SET_BYTES = 12 * 1024 * 1024  # single-copy per-step budget (x2 double buffer ~24 MiB)


def _ceil_to(v, m):
    return ((v + m - 1) // m) * m


def _ceil_div(a, b):
    return -(-a // b)


def _sublane_multiple(dtype):
    # dtype-correct sublane alignment: f32 -> 8, bf16/f16 -> 16, int8/fp8 -> 32
    return {4: 8, 2: 16, 1: 32}[jnp.dtype(dtype).itemsize]


def _pick_row_block(n_rows, hw_pad, itemsize, sub, k2):
    """Rows of the (B*C, HW_pad) array processed per grid step."""
    # 1 input plane + k2 output planes per row; the (k2, hw_pad) mask is negligible.
    bytes_per_row = (1 + k2) * hw_pad * itemsize
    blk = max(sub, (_WORKING_SET_BYTES // bytes_per_row) // sub * sub)
    # Keep >= 2 grid steps whenever sublane alignment allows, so both v7x
    # TensorCores get work on the "parallel" axis (no-op on 1-TC v5e/v6e).
    cap = max(sub, _ceil_to(_ceil_div(n_rows, 2), sub))
    blk = min(blk, cap)
    # Re-balance so steps are even-sized (minimizes padded/wasted rows).
    steps = _ceil_div(n_rows, blk)
    blk = max(sub, _ceil_to(_ceil_div(n_rows, steps), sub))
    return blk


def _boundary_masks(H, W, hw_pad, k, dtype):
    """(k*k, hw_pad) 0/1 validity masks for each tap (in x's dtype, tiny)."""
    pad = k // 2
    lane = jnp.arange(hw_pad, dtype=jnp.int32)
    row = lane // W
    col = lane % W
    in_spatial = lane < H * W
    masks = []
    for p in range(k):
        dh = p - pad
        for q in range(k):
            dw = q - pad
            valid = (in_spatial
                     & (row + dh >= 0) & (row + dh < H)
                     & (col + dw >= 0) & (col + dw < W))
            masks.append(valid)
    return jnp.stack(masks, axis=0).astype(dtype)


def _make_unfold_kernel(W, hw_pad, k):
    pad = k // 2

    def kernel(mask_ref, x_ref, o_ref):
        # mask_ref: (k*k, hw_pad);  x_ref: (BLK, hw_pad);  o_ref: (BLK, k*k*hw_pad)
        x = x_ref[...]
        for p in range(k):
            dh = p - pad
            for q in range(k):
                dw = q - pad
                ki = p * k + q
                if dh == 0 and dw == 0:
                    plane = x                       # center tap: identity, no mask
                else:
                    # plane[n] = x[n + shift] on valid lanes, 0 elsewhere; valid lanes
                    # never wrap, so the boundary mask reproduces zero padding exactly.
                    shift = dh * W + dw
                    rolled = pltpu.roll(x, shift=(-shift) % hw_pad, axis=1)
                    m = mask_ref[pl.ds(ki, 1), :]   # (1, hw_pad) -> sublane broadcast
                    plane = jnp.where(m != 0, rolled, 0)
                # single, 128-aligned lane-dense store per tap (hw_pad % 128 == 0)
                o_ref[:, ki * hw_pad:(ki + 1) * hw_pad] = plane

    return kernel


def unfold(x, kernel_size=KERNEL_SIZE):
    """Pallas equivalent of Unfold(kernel_size).forward(x) for NCHW `x`."""
    assert kernel_size == KERNEL_SIZE, "kernel specialized for kernel_size=3"
    B, C, H, W = x.shape
    k = kernel_size
    k2 = k * k
    HW = H * W
    dtype = x.dtype
    itemsize = jnp.dtype(dtype).itemsize
    sub = _sublane_multiple(dtype)

    hw_pad = _ceil_to(HW, _LANE)            # lane-dense minor dim
    BC = B * C
    blk = _pick_row_block(BC, hw_pad, itemsize, sub, k2)
    bc_pad = _ceil_to(BC, blk)

    # Fold batch into the row axis, flatten spatial (contiguous), pad to block grid.
    x_flat = x.reshape(BC, HW)
    if hw_pad != HW or bc_pad != BC:
        x_flat = jnp.pad(x_flat, ((0, bc_pad - BC), (0, hw_pad - HW)))

    masks = _boundary_masks(H, W, hw_pad, k, dtype)   # (k2, hw_pad), ~9*hw_pad elems

    out = pl.pallas_call(
        _make_unfold_kernel(W, hw_pad, k),
        out_shape=jax.ShapeDtypeStruct((bc_pad, k2 * hw_pad), dtype),
        grid=(bc_pad // blk,),
        in_specs=[
            pl.BlockSpec((k2, hw_pad), lambda r: (0, 0)),    # boundary masks (constant)
            pl.BlockSpec((blk, hw_pad), lambda r: (r, 0)),   # input rows
        ],
        out_specs=pl.BlockSpec((blk, k2 * hw_pad), lambda r: (r, 0)),
        compiler_params=pltpu.CompilerParams(
            dimension_semantics=("parallel",),
            vmem_limit_bytes=_VMEM_LIMIT_BYTES,
        ),
        cost_estimate=pl.CostEstimate(
            flops=0,
            transcendentals=0,
            bytes_accessed=(1 + k2) * B * C * HW * itemsize,
        ),
    )(masks, x_flat)

    # (bc_pad, k2*hw_pad) -> (B, C*k2, HW), matching the torch channel/tap ordering.
    out = out.reshape(bc_pad, k2, hw_pad)
    if hw_pad != HW or bc_pad != BC:
        out = out[:BC, :, :HW]
    return out.reshape(B, C * k2, HW)


def _unfold_ref(x, kernel_size=KERNEL_SIZE):
    """Pure-JAX reference for correctness checking."""
    B, C, H, W = x.shape
    k = kernel_size
    pad = k // 2
    xp = jnp.pad(x, ((0, 0), (0, 0), (pad, pad), (pad, pad)))
    planes = [xp[:, :, p:p + H, q:q + W] for p in range(k) for q in range(k)]
    y = jnp.stack(planes, axis=2)  # (B, C, k*k, H, W)
    return y.reshape(B, C * k * k, H * W)


if __name__ == "__main__":
    # The module's only "parameter" is the fixed identity conv weight (eye(k*k)),
    # which is baked into the kernel's shift logic, so no parameter init is needed.
    key = jax.random.PRNGKey(0)
    B, C, H, W = 2, 4, 16, 16
    x = jax.random.normal(key, (B, C, H, W), dtype=jnp.float32)

    y = jax.block_until_ready(unfold(x))

    y_ref = _unfold_ref(x)
    assert y.shape == (B, C * 9, H * W), y.shape
    assert jnp.allclose(y, y_ref, atol=1e-6), "mismatch vs reference"

    print("KERNEL_OK")
</pallas_src>

<mosaic_0001>
module attributes {stable_mosaic.version = 11 : i64} {
  func.func @kernel(%arg0: i32, %arg1: memref<9x256xf32, #tpu.memory_space<vmem>>, %arg2: memref<8x256xf32, #tpu.memory_space<vmem>>, %arg3: memref<8x2304xf32, #tpu.memory_space<vmem>>) attributes {dimension_semantics = [#tpu.dimension_semantics<parallel>], iteration_bounds = array<i64: 1>, scalar_prefetch = 0 : i64, scratch_operands = 0 : i64, tpu.core_type = #tpu.core_type<tc>, window_params = [{pipeline_mode = #tpu.pipeline_mode<synchronous>, transform_indices = @transform_0, window_bounds = array<i64: 9, 256>}, {transform_indices = @transform_1, window_bounds = array<i64: 8, 256>}, {transform_indices = @transform_2, window_bounds = array<i64: 8, 2304>}]} {
    %c0 = arith.constant 0 : index
    %c0_0 = arith.constant 0 : index
    %0 = vector.load %arg2[%c0, %c0_0] : memref<8x256xf32, #tpu.memory_space<vmem>>, vector<8x256xf32>
    %c17_i32 = arith.constant 17 : i32
    %1 = tpu.dynamic_rotate %0 by %c17_i32 dim 1 : vector<8x256xf32>, i32 -> vector<8x256xf32>
    %c0_1 = arith.constant 0 : index
    %c0_2 = arith.constant 0 : index
    %2 = vector.load %arg1[%c0_1, %c0_2] : memref<9x256xf32, #tpu.memory_space<vmem>>, vector<1x256xf32>
    %cst = arith.constant 0.000000e+00 : f32
    %3 = vector.broadcast %cst : f32 to vector<1x256xf32>
    %4 = arith.cmpf one, %2, %3 : vector<1x256xf32>
    %c0_i32 = arith.constant 0 : i32
    %5 = arith.sitofp %c0_i32 : i32 to f32
    %6 = vector.shape_cast %4 : vector<1x256xi1> to vector<1x256xi1>
    %7 = vector.broadcast %6 : vector<1x256xi1> to vector<8x256xi1>
    %8 = vector.broadcast %5 : f32 to vector<8x256xf32>
    %9 = arith.select %7, %1, %8 : vector<8x256xi1>, vector<8x256xf32>
    %c0_3 = arith.constant 0 : index
    %c0_4 = arith.constant 0 : index
    %10 = vector.load %arg3[%c0_3, %c0_4] : memref<8x2304xf32, #tpu.memory_space<vmem>>, vector<8x256xf32>
    tpu.vector_store %arg3[%c0_3, %c0_4], %9 {strides = array<i32>} : memref<8x2304xf32, #tpu.memory_space<vmem>>, vector<8x256xf32>,
    %c16_i32 = arith.constant 16 : i32
    %11 = tpu.dynamic_rotate %0 by %c16_i32 dim 1 : vector<8x256xf32>, i32 -> vector<8x256xf32>
    %c1 = arith.constant 1 : index
    %c0_5 = arith.constant 0 : index
    %12 = vector.load %arg1[%c1, %c0_5] : memref<9x256xf32, #tpu.memory_space<vmem>>, vector<1x256xf32>
    %cst_6 = arith.constant 0.000000e+00 : f32
    %13 = vector.broadcast %cst_6 : f32 to vector<1x256xf32>
    %14 = arith.cmpf one, %12, %13 : vector<1x256xf32>
    %c0_i32_7 = arith.constant 0 : i32
    %15 = arith.sitofp %c0_i32_7 : i32 to f32
    %16 = vector.shape_cast %14 : vector<1x256xi1> to vector<1x256xi1>
    %17 = vector.broadcast %16 : vector<1x256xi1> to vector<8x256xi1>
    %18 = vector.broadcast %15 : f32 to vector<8x256xf32>
    %19 = arith.select %17, %11, %18 : vector<8x256xi1>, vector<8x256xf32>
    %c0_8 = arith.constant 0 : index
    %c256 = arith.constant 256 : index
    %20 = vector.load %arg3[%c0_8, %c256] : memref<8x2304xf32, #tpu.memory_space<vmem>>, vector<8x256xf32>
    tpu.vector_store %arg3[%c0_8, %c256], %19 {strides = array<i32>} : memref<8x2304xf32, #tpu.memory_space<vmem>>, vector<8x256xf32>,
    %c15_i32 = arith.constant 15 : i32
    %21 = tpu.dynamic_rotate %0 by %c15_i32 dim 1 : vector<8x256xf32>, i32 -> vector<8x256xf32>
    %c2 = arith.constant 2 : index
    %c0_9 = arith.constant 0 : index
    %22 = vector.load %arg1[%c2, %c0_9] : memref<9x256xf32, #tpu.memory_space<vmem>>, vector<1x256xf32>
    %cst_10 = arith.constant 0.000000e+00 : f32
    %23 = vector.broadcast %cst_10 : f32 to vector<1x256xf32>
    %24 = arith.cmpf one, %22, %23 : vector<1x256xf32>
    %c0_i32_11 = arith.constant 0 : i32
    %25 = arith.sitofp %c0_i32_11 : i32 to f32
    %26 = vector.shape_cast %24 : vector<1x256xi1> to vector<1x256xi1>
    %27 = vector.broadcast %26 : vector<1x256xi1> to vector<8x256xi1>
    %28 = vector.broadcast %25 : f32 to vector<8x256xf32>
    %29 = arith.select %27, %21, %28 : vector<8x256xi1>, vector<8x256xf32>
    %c0_12 = arith.constant 0 : index
    %c512 = arith.constant 512 : index
    %30 = vector.load %arg3[%c0_12, %c512] : memref<8x2304xf32, #tpu.memory_space<vmem>>, vector<8x256xf32>
    tpu.vector_store %arg3[%c0_12, %c512], %29 {strides = array<i32>} : memref<8x2304xf32, #tpu.memory_space<vmem>>, vector<8x256xf32>,
    %c1_i32 = arith.constant 1 : i32
    %31 = tpu.dynamic_rotate %0 by %c1_i32 dim 1 : vector<8x256xf32>, i32 -> vector<8x256xf32>
    %c3 = arith.constant 3 : index
    %c0_13 = arith.constant 0 : index
    %32 = vector.load %arg1[%c3, %c0_13] : memref<9x256xf32, #tpu.memory_space<vmem>>, vector<1x256xf32>
    %cst_14 = arith.constant 0.000000e+00 : f32
    %33 = vector.broadcast %cst_14 : f32 to vector<1x256xf32>
    %34 = arith.cmpf one, %32, %33 : vector<1x256xf32>
    %c0_i32_15 = arith.constant 0 : i32
    %35 = arith.sitofp %c0_i32_15 : i32 to f32
    %36 = vector.shape_cast %34 : vector<1x256xi1> to vector<1x256xi1>
    %37 = vector.broadcast %36 : vector<1x256xi1> to vector<8x256xi1>
    %38 = vector.broadcast %35 : f32 to vector<8x256xf32>
    %39 = arith.select %37, %31, %38 : vector<8x256xi1>, vector<8x256xf32>
    %c0_16 = arith.constant 0 : index
    %c768 = arith.constant 768 : index
    %40 = vector.load %arg3[%c0_16, %c768] : memref<8x2304xf32, #tpu.memory_space<vmem>>, vector<8x256xf32>
    tpu.vector_store %arg3[%c0_16, %c768], %39 {strides = array<i32>} : memref<8x2304xf32, #tpu.memory_space<vmem>>, vector<8x256xf32>,
    %c0_17 = arith.constant 0 : index
    %c1024 = arith.constant 1024 : index
    %41 = vector.load %arg3[%c0_17, %c1024] : memref<8x2304xf32, #tpu.memory_space<vmem>>, vector<8x256xf32>
    tpu.vector_store %arg3[%c0_17, %c1024], %0 {strides = array<i32>} : memref<8x2304xf32, #tpu.memory_space<vmem>>, vector<8x256xf32>,
    %c255_i32 = arith.constant 255 : i32
    %42 = tpu.dynamic_rotate %0 by %c255_i32 dim 1 : vector<8x256xf32>, i32 -> vector<8x256xf32>
    %c5 = arith.constant 5 : index
    %c0_18 = arith.constant 0 : index
    %43 = vector.load %arg1[%c5, %c0_18] : memref<9x256xf32, #tpu.memory_space<vmem>>, vector<1x256xf32>
    %cst_19 = arith.constant 0.000000e+00 : f32
    %44 = vector.broadcast %cst_19 : f32 to vector<1x256xf32>
    %45 = arith.cmpf one, %43, %44 : vector<1x256xf32>
    %c0_i32_20 = arith.constant 0 : i32
    %46 = arith.sitofp %c0_i32_20 : i32 to f32
    %47 = vector.shape_cast %45 : vector<1x256xi1> to vector<1x256xi1>
    %48 = vector.broadcast %47 : vector<1x256xi1> to vector<8x256xi1>
    %49 = vector.broadcast %46 : f32 to vector<8x256xf32>
    %50 = arith.select %48, %42, %49 : vector<8x256xi1>, vector<8x256xf32>
    %c0_21 = arith.constant 0 : index
    %c1280 = arith.constant 1280 : index
    %51 = vector.load %arg3[%c0_21, %c1280] : memref<8x2304xf32, #tpu.memory_space<vmem>>, vector<8x256xf32>
    tpu.vector_store %arg3[%c0_21, %c1280], %50 {strides = array<i32>} : memref<8x2304xf32, #tpu.memory_space<vmem>>, vector<8x256xf32>,
    %c241_i32 = arith.constant 241 : i32
    %52 = tpu.dynamic_rotate %0 by %c241_i32 dim 1 : vector<8x256xf32>, i32 -> vector<8x256xf32>
    %c6 = arith.constant 6 : index
    %c0_22 = arith.constant 0 : index
    %53 = vector.load %arg1[%c6, %c0_22] : memref<9x256xf32, #tpu.memory_space<vmem>>, vector<1x256xf32>
    %cst_23 = arith.constant 0.000000e+00 : f32
    %54 = vector.broadcast %cst_23 : f32 to vector<1x256xf32>
    %55 = arith.cmpf one, %53, %54 : vector<1x256xf32>
    %c0_i32_24 = arith.constant 0 : i32
    %56 = arith.sitofp %c0_i32_24 : i32 to f32
    %57 = vector.shape_cast %55 : vector<1x256xi1> to vector<1x256xi1>
    %58 = vector.broadcast %57 : vector<1x256xi1> to vector<8x256xi1>
    %59 = vector.broadcast %56 : f32 to vector<8x256xf32>
    %60 = arith.select %58, %52, %59 : vector<8x256xi1>, vector<8x256xf32>
    %c0_25 = arith.constant 0 : index
    %c1536 = arith.constant 1536 : index
    %61 = vector.load %arg3[%c0_25, %c1536] : memref<8x2304xf32, #tpu.memory_space<vmem>>, vector<8x256xf32>
    tpu.vector_store %arg3[%c0_25, %c1536], %60 {strides = array<i32>} : memref<8x2304xf32, #tpu.memory_space<vmem>>, vector<8x256xf32>,
    %c240_i32 = arith.constant 240 : i32
    %62 = tpu.dynamic_rotate %0 by %c240_i32 dim 1 : vector<8x256xf32>, i32 -> vector<8x256xf32>
    %c7 = arith.constant 7 : index
    %c0_26 = arith.constant 0 : index
    %63 = vector.load %arg1[%c7, %c0_26] : memref<9x256xf32, #tpu.memory_space<vmem>>, vector<1x256xf32>
    %cst_27 = arith.constant 0.000000e+00 : f32
    %64 = vector.broadcast %cst_27 : f32 to vector<1x256xf32>
    %65 = arith.cmpf one, %63, %64 : vector<1x256xf32>
    %c0_i32_28 = arith.constant 0 : i32
    %66 = arith.sitofp %c0_i32_28 : i32 to f32
    %67 = vector.shape_cast %65 : vector<1x256xi1> to vector<1x256xi1>
    %68 = vector.broadcast %67 : vector<1x256xi1> to vector<8x256xi1>
    %69 = vector.broadcast %66 : f32 to vector<8x256xf32>
    %70 = arith.select %68, %62, %69 : vector<8x256xi1>, vector<8x256xf32>
    %c0_29 = arith.constant 0 : index
    %c1792 = arith.constant 1792 : index
    %71 = vector.load %arg3[%c0_29, %c1792] : memref<8x2304xf32, #tpu.memory_space<vmem>>, vector<8x256xf32>
    tpu.vector_store %arg3[%c0_29, %c1792], %70 {strides = array<i32>} : memref<8x2304xf32, #tpu.memory_space<vmem>>, vector<8x256xf32>,
    %c239_i32 = arith.constant 239 : i32
    %72 = tpu.dynamic_rotate %0 by %c239_i32 dim 1 : vector<8x256xf32>, i32 -> vector<8x256xf32>
    %c8 = arith.constant 8 : index
    %c0_30 = arith.constant 0 : index
    %73 = vector.load %arg1[%c8, %c0_30] : memref<9x256xf32, #tpu.memory_space<vmem>>, vector<1x256xf32>
    %cst_31 = arith.constant 0.000000e+00 : f32
    %74 = vector.broadcast %cst_31 : f32 to vector<1x256xf32>
    %75 = arith.cmpf one, %73, %74 : vector<1x256xf32>
    %c0_i32_32 = arith.constant 0 : i32
    %76 = arith.sitofp %c0_i32_32 : i32 to f32
    %77 = vector.shape_cast %75 : vector<1x256xi1> to vector<1x256xi1>
    %78 = vector.broadcast %77 : vector<1x256xi1> to vector<8x256xi1>
    %79 = vector.broadcast %76 : f32 to vector<8x256xf32>
    %80 = arith.select %78, %72, %79 : vector<8x256xi1>, vector<8x256xf32>
    %c0_33 = arith.constant 0 : index
    %c2048 = arith.constant 2048 : index
    %81 = vector.load %arg3[%c0_33, %c2048] : memref<8x2304xf32, #tpu.memory_space<vmem>>, vector<8x256xf32>
    tpu.vector_store %arg3[%c0_33, %c2048], %80 {strides = array<i32>} : memref<8x2304xf32, #tpu.memory_space<vmem>>, vector<8x256xf32>,
    return
  }
  func.func @transform_0(%arg0: i32) -> (i32, i32) {
    %c0_i32 = arith.constant 0 : i32
    %c0_i32_0 = arith.constant 0 : i32
    %c0_i32_1 = arith.constant 0 : i32
    return %c0_i32, %c0_i32_0 : i32, i32
  }
  func.func @transform_1(%arg0: i32) -> (i32, i32) {
    %c0_i32 = arith.constant 0 : i32
    %c0_i32_0 = arith.constant 0 : i32
    return %arg0, %c0_i32 : i32, i32
  }
  func.func @transform_2(%arg0: i32) -> (i32, i32) {
    %c0_i32 = arith.constant 0 : i32
    %c0_i32_0 = arith.constant 0 : i32
    return %arg0, %c0_i32 : i32, i32
  }
}

</mosaic_0001>

<bundles_post_ra>
// kernel: tpu_custom_call.1
= control target key start
LH: loop header
LB: loop body
LE: loop exit
PB: predicated region body
PF: predicated region fallthrough
CT: control target
= control target key end

     0   :  { %7 = vsyncpa [#allocation3], 0  ;;  %s405_s0 = inlined_call_operand.hbm [shape: f32[9,256], index: 0, kind: input, shape index: {}]   ;;  %s406_s1 = inlined_call_operand.hbm [shape: f32[8,256], index: 1, kind: input, shape index: {}]   ;;  %s407_s2 = inlined_call_operand.hbm [shape: f32[8,2304], index: 2, kind: output, shape index: {}]  }
   0x1   :  { %8 = vsyncpa [#allocation6], 0 }
   0x2   :  { %9 = vsyncpa [#allocation4], 0  ;;  %s14_s11 = sshll.u32 %s405_s0, 4  ;;  %s308_s12 = smov [#allocation2]   ;;  %s15_s11 = int_to_ptr.hbm [resolvable:$true] %s14_s11 }
   0x3   :  { %s16_s13 = sshll.u32 %s308_s12, 4  ;;  %s28_s16 = sshll.u32 %s406_s1, 4  ;;  %s17_s13 = int_to_ptr.vmem [resolvable:$true] %s16_s13  ;;  %s29_s16 = int_to_ptr.hbm [resolvable:$true] %s28_s16 }
   0x4   :  { %s309_s17 = smov 256   ;;  %s310_s18 = smov 16  }
   0x5   :  { %22 = dma.hbm_to_vmem [thread:$0]  %s15_s11, 512, %s17_s13, [#allocation3], %s309_s17, %s309_s17, %s310_s18  }
   0x6   :  { %s311_s19 = smov [#allocation5]  }
   0x7   :  { %s30_s20 = sshll.u32 %s311_s19, 4  ;;  %s31_s20 = int_to_ptr.vmem [resolvable:$true] %s30_s20 }
   0x8   :  { %33 = dma.hbm_to_vmem [thread:$0]  %s29_s16, 256, %s31_s20, [#allocation6]  }
   0x9   :  { %302 = dma.done.wait [#allocation3], 512  }
   0xa   :  { %303 = vsyncadd [#allocation3], 4294966784 }
   0xb   :  { %304 = dma.done.wait [#allocation6], 256  }
   0xc   :  { %305 = vsyncadd [#allocation6], 4294967040  ;;  %v42_v0 = vld [vmem:[#allocation5] sm:$0xff]  ;;  %s312_s0 = smov 17   ;;  %v43_v1 = vld [vmem:[#allocation5 + $0x8] sm:$0xff]  ;;  %s313_s1 = smov 15   ;;  %v48_v3 = vlaneseq }
   0xd   :  { %64 = vrot.lane.b32.xlu1 %v42_v0, %s310_s18  ;;  %121 = vst [vmem:[#allocation7 + $0x40] sm:$0xff] %v42_v0  ;;  %44 = vrot.lane.b32.xlu0 %v42_v0, %s312_s0  ;;  %s314_s21 = smov 1   ;;  %s315_s22 = smov 127   ;;  %v91_v2 = vld [vmem:[#allocation2 + $0x2] ss:$8 sm:$0x3] }
   0xe   :  { %122 = vst [vmem:[#allocation7 + $0x48] sm:$0xff] %v43_v1  ;;  %83 = vrot.lane.b32.xlu2 %v42_v0, %s313_s1  ;;  %s316_s23 = smov 113   ;;  %s317_s24 = smov 112   ;;  %vm92_vm0 = vcmp.ne.f32.partialorder %v91_v2, 0.0  ;;  %v319_v5 = vmov 0   ;;  %v343_v7 = vand.u32 127, %v48_v3 }
   0xf   :  { %s318_s25 = smov 111   ;;  %v93_v6 = vsel %vm92_vm0, 1, %v319_v5  ;;  %v72_v15 = vld [vmem:[#allocation2 + $0x1] ss:$8 sm:$0x3]  ;;  %s320_s26 = smov [#allocation7]  }
  0x10   :  { %v94_v8 = vperm.slane %v93_v6, 0  ;;  %v95_v9 = vperm.slane %v93_v6, 1  ;;  %vm87_vm1 = vcmp.lt.s32.totalorder %v343_v7, 15  ;;  %v53_v16 = vld [vmem:[#allocation2] ss:$8 sm:$0x3] }
  0x11   :  { %vm73_vm4 = vcmp.ne.f32.partialorder %v72_v15, 0.0  ;;  %vm54_vm5 = vcmp.ne.f32.partialorder %v53_v16, 0.0  ;;  %v110_v21 = vld [vmem:[#allocation2 + $0x3] ss:$8 sm:$0x3]  ;;  %vm68_vm7 = vcmp.lt.s32.totalorder %v343_v7, 16 }
  0x12   :  { %vm96_vm2 = vcmp.eq.s32.totalorder %v94_v8, 1  ;;  %vm97_vm3 = vcmp.eq.s32.totalorder %v95_v9, 1  ;;  %v74_v19 = vsel %vm73_vm4, 1, %v319_v5  ;;  %v55_v20 = vsel %vm54_vm5, 1, %v319_v5  ;;  %s204_s27 = sshll.u32 %s320_s26, 4  ;;  %s206_s30 = sshll.u32 %s407_s2, 4  ;;  %s205_s27 = int_to_ptr.vmem [resolvable:$true] %s204_s27  ;;  %s207_s30 = int_to_ptr.hbm [resolvable:$true] %s206_s30 }
  0x13   :  { %v75_v22 = vperm.slane %v74_v19, 0  ;;  %v76_v23 = vperm.slane %v74_v19, 1  ;;  %v56_v24 = vperm.slane %v55_v20, 0  ;;  %v57_v25 = vperm.slane %v55_v20, 1 }
  0x14   :  { %vm111_vm6 = vcmp.ne.f32.partialorder %v110_v21, 0.0  ;;  %vm50_vm8 = vcmp.lt.s32.totalorder %v343_v7, 17  ;;  %v131_v37 = vld [vmem:[#allocation2 + $0x5] ss:$8 sm:$0x3]  ;;  %vm106_vm15 = vcmp.lt.s32.totalorder %v343_v7, 1 }
  0x15   :  { %66 = vrot.lane.b32.xlu1 %v43_v1, %s310_s18  ;;  %46 = vrot.lane.b32.xlu0 %v43_v1, %s312_s0  ;;  %vm350_vm9 = vcmp.eq.s32.totalorder %v75_v22, 1  ;;  %vm354_vm10 = vcmp.eq.s32.totalorder %v76_v23, 1  ;;  %vm358_vm11 = vcmp.eq.s32.totalorder %v56_v24, 1  ;;  %vm362_vm12 = vcmp.eq.s32.totalorder %v57_v25, 1 }
  0x16   :  { %85 = vrot.lane.b32.xlu2 %v43_v1, %s313_s1  ;;  %v112_v32 = vsel %vm111_vm6, 1, %v319_v5  ;;  %v150_v41 = vld [vmem:[#allocation2 + $0x6] ss:$8 sm:$0x3]  ;;  %vm132_vm13 = vcmp.ne.f32.partialorder %v131_v37, 0.0  ;;  %vm146_vm4 = vcmp.lt.s32.totalorder %v343_v7, 113 }
  0x17   :  { %v113_v43 = vperm.slane %v112_v32, 0  ;;  %v114_v44 = vperm.slane %v112_v32, 1  ;;  %vm151_vm14 = vcmp.ne.f32.partialorder %v150_v41, 0.0  ;;  %v133_v48 = vsel %vm132_vm13, 1, %v319_v5 }
  0x18   :  { %v152_v49 = vsel %vm151_vm14, 1, %v319_v5  ;;  %v169_v54 = vld [vmem:[#allocation2 + $0x7] ss:$8 sm:$0x3]  ;;  %v134_v55 = vperm.slane %v133_v48, 0  ;;  %v135_v56 = vperm.slane %v133_v48, 1 }
  0x19   :  { %vm115_vm0 = vcmp.eq.s32.totalorder %v113_v43, 1  ;;  %v153_v57 = vperm.slane %v152_v49, 0  ;;  %v154_v58 = vperm.slane %v152_v49, 1  ;;  %vm184_vm13 = vcmp.lt.s32.totalorder %v343_v7, 111 }
  0x1a   :  { %vm136_vm5 = vcmp.eq.s32.totalorder %v134_v55, 1  ;;  %vm380_vm6 = vcmp.eq.s32.totalorder %v135_v56, 1 }
  0x1d   :  { %104 = vrot.lane.b32.xlu1 %v43_v1, %s314_s21  ;;  %102 = vrot.lane.b32.xlu0 %v42_v0, %s314_s21 }
  0x1e   :  { %123 = vrot.lane.b32.xlu2 %v42_v0, %s315_s22 }
  0x25   :  { %142 = vrot.lane.b32.xlu1 %v42_v0, %s316_s23  ;;  %125 = vrot.lane.b32.xlu0 %v43_v1, %s315_s22 }
  0x26   :  { %144 = vrot.lane.b32.xlu2 %v43_v1, %s316_s23 }
  0x2d   :  { %163 = vrot.lane.b32.xlu1 %v43_v1, %s317_s24  ;;  %161 = vrot.lane.b32.xlu0 %v42_v0, %s317_s24 }
  0x2e   :  { %180 = vrot.lane.b32.xlu2 %v42_v0, %s318_s25 }
  0x35   :  { %182 = vrot.lane.b32.xlu0 %v43_v1, %s318_s25 }
  0x68   :  { %v84_v4 = vpop.permute.xlu2 %83 }
  0x70   :  { %v86_v10 = vpop.permute.xlu2 %85 }
  0x71   :  { %v88_v11 = vsel %vm87_vm1, %v84_v4, %v86_v10  ;;  %v89_v12 = vsel %vm87_vm1, %v86_v10, %v84_v4  ;;  %vm116_vm1 = vcmp.eq.s32.totalorder %v114_v44, 1 }
  0x72   :  { %v98_v13 = vsel %vm96_vm2, %v89_v12, 0.0  ;;  %v99_v14 = vsel %vm97_vm3, %v88_v11, 0.0  ;;  %vm170_vm2 = vcmp.ne.f32.partialorder %v169_v54, 0.0  ;;  %vm127_vm3 = vcmp.lt.s32.totalorder %v343_v7, 127 }
  0x73   :  { %100 = vst [vmem:[#allocation7 + $0x20] sm:$0xff] %v98_v13  ;;  %v171_v1 = vsel %vm170_vm2, 1, %v319_v5  ;;  %v188_v11 = vld [vmem:[#allocation2 + $0x10] ss:$8 sm:$0x3] }
  0x74   :  { %101 = vst [vmem:[#allocation7 + $0x28] sm:$0xff] %v99_v14  ;;  %v172_v13 = vperm.slane %v171_v1, 0  ;;  %v173_v14 = vperm.slane %v171_v1, 1 }
  0x78   :  { %v124_v45 = vpop.permute.xlu2 %123 }
  0x7f   :  { %v65_v17 = vpop.permute.xlu1 %64  ;;  %v45_v18 = vpop.permute.xlu0 %44 }
  0x80   :  { %v145_v59 = vpop.permute.xlu2 %144 }
  0x87   :  { %v67_v29 = vpop.permute.xlu1 %66  ;;  %v47_v31 = vpop.permute.xlu0 %46 }
  0x88   :  { %v69_v33 = vsel %vm68_vm7, %v65_v17, %v67_v29  ;;  %v70_v34 = vsel %vm68_vm7, %v67_v29, %v65_v17  ;;  %v51_v35 = vsel %vm50_vm8, %v45_v18, %v47_v31  ;;  %v52_v36 = vsel %vm50_vm8, %v47_v31, %v45_v18  ;;  %v181_v24 = vpop.permute.xlu2 %180 }
  0x89   :  { %v79_v38 = vsel %vm350_vm9, %v70_v34, 0.0  ;;  %v80_v39 = vsel %vm354_vm10, %v69_v33, 0.0  ;;  %v60_v40 = vsel %vm358_vm11, %v52_v36, 0.0  ;;  %v61_v42 = vsel %vm362_vm12, %v51_v35, 0.0 }
  0x8a   :  { %81 = vst [vmem:[#allocation7 + $0x10] sm:$0xff] %v79_v38  ;;  %vm384_vm7 = vcmp.eq.s32.totalorder %v153_v57, 1  ;;  %vm388_vm8 = vcmp.eq.s32.totalorder %v154_v58, 1  ;;  %vm189_vm9 = vcmp.ne.f32.partialorder %v188_v11, 0.0  ;;  %vm165_vm10 = vcmp.lt.s32.totalorder %v343_v7, 112 }
  0x8b   :  { %82 = vst [vmem:[#allocation7 + $0x18] sm:$0xff] %v80_v39  ;;  %vm174_vm11 = vcmp.eq.s32.totalorder %v172_v13, 1  ;;  %vm175_vm12 = vcmp.eq.s32.totalorder %v173_v14, 1  ;;  %v190_v17 = vsel %vm189_vm9, 1, %v319_v5 }
  0x8c   :  { %62 = vst [vmem:[#allocation7] sm:$0xff] %v60_v40  ;;  %v191_v22 = vperm.slane %v190_v17, 0  ;;  %v192_v23 = vperm.slane %v190_v17, 1 }
  0x8d   :  { %63 = vst [vmem:[#allocation7 + $0x8] sm:$0xff] %v61_v42 }
  0x8e   :  { %vm193_vm14 = vcmp.eq.s32.totalorder %v191_v22, 1 }
  0x8f   :  { %v105_v46 = vpop.permute.xlu1 %104  ;;  %v103_v47 = vpop.permute.xlu0 %102 }
  0x90   :  { %v107_v50 = vsel %vm106_vm15, %v103_v47, %v105_v46  ;;  %v108_v51 = vsel %vm106_vm15, %v105_v46, %v103_v47  ;;  %vm194_vm15 = vcmp.eq.s32.totalorder %v192_v23, 1 }
  0x91   :  { %v117_v52 = vsel %vm115_vm0, %v108_v51, 0.0  ;;  %v118_v53 = vsel %vm116_vm1, %v107_v50, 0.0 }
  0x92   :  { %119 = vst [vmem:[#allocation7 + $0x30] sm:$0xff] %v117_v52 }
  0x93   :  { %120 = vst [vmem:[#allocation7 + $0x38] sm:$0xff] %v118_v53 }
  0x97   :  { %v143_v62 = vpop.permute.xlu1 %142  ;;  %v126_v63 = vpop.permute.xlu0 %125 }
  0x98   :  { %v128_v2 = vsel %vm127_vm3, %v124_v45, %v126_v63  ;;  %v129_v3 = vsel %vm127_vm3, %v126_v63, %v124_v45  ;;  %v147_v4 = vsel %vm146_vm4, %v143_v62, %v145_v59  ;;  %v148_v6 = vsel %vm146_vm4, %v145_v59, %v143_v62 }
  0x99   :  { %v138_v8 = vsel %vm136_vm5, %v128_v2, 0.0  ;;  %v139_v9 = vsel %vm380_vm6, %v129_v3, 0.0  ;;  %v157_v10 = vsel %vm384_vm7, %v147_v4, 0.0  ;;  %v158_v12 = vsel %vm388_vm8, %v148_v6, 0.0 }
  0x9a   :  { %140 = vst [vmem:[#allocation7 + $0x50] sm:$0xff] %v138_v8 }
  0x9b   :  { %141 = vst [vmem:[#allocation7 + $0x58] sm:$0xff] %v139_v9 }
  0x9c   :  { %159 = vst [vmem:[#allocation7 + $0x60] sm:$0xff] %v157_v10 }
  0x9d   :  { %160 = vst [vmem:[#allocation7 + $0x68] sm:$0xff] %v158_v12 }
  0x9f   :  { %v164_v15 = vpop.permute.xlu1 %163  ;;  %v162_v16 = vpop.permute.xlu0 %161 }
  0xa0   :  { %v166_v18 = vsel %vm165_vm10, %v162_v16, %v164_v15  ;;  %v167_v19 = vsel %vm165_vm10, %v164_v15, %v162_v16 }
  0xa1   :  { %v176_v20 = vsel %vm174_vm11, %v166_v18, 0.0  ;;  %v177_v21 = vsel %vm175_vm12, %v167_v19, 0.0 }
  0xa2   :  { %178 = vst [vmem:[#allocation7 + $0x70] sm:$0xff] %v176_v20 }
  0xa3   :  { %179 = vst [vmem:[#allocation7 + $0x78] sm:$0xff] %v177_v21 }
  0xa7   :  { %v183_v5 = vpop.permute.xlu0 %182 }
  0xa8   :  { %v185_v25 = vsel %vm184_vm13, %v181_v24, %v183_v5  ;;  %v186_v26 = vsel %vm184_vm13, %v183_v5, %v181_v24 }
  0xa9   :  { %v195_v27 = vsel %vm193_vm14, %v185_v25, 0.0  ;;  %v196_v28 = vsel %vm194_vm15, %v186_v26, 0.0 }
  0xaa   :  { %197 = vst [vmem:[#allocation7 + $0x80] sm:$0xff] %v195_v27 }
  0xab   :  { %198 = vst [vmem:[#allocation7 + $0x88] sm:$0xff] %v196_v28 }
  0xac   :  { %209 = dma.vmem_to_hbm [thread:$0]  %s205_s27, 2304, %s207_s30, [#allocation4]  }
  0xad   :  { %306 = dma.done.wait [#allocation4], 2304  }
  0xae   :  { %307 = vsyncadd [#allocation4], 4294964992 }
  0xaf   :  { %214 = vsyncpa [#allocation3], 1 }
  0xb0   :  { %215 = vsyncpa [#allocation6], 1 }
  0xb1   :  { %216 = vsyncpa [#allocation4], 1 }

</bundles_post_ra>
